<compile_context>
chip_gen: v7x
topology: tpu7x:2x2x1
jax: 0.10.0
libtpu: 0.0.40
codegen_flags: <defaults>
</compile_context>

<pallas_src>
import jax
import jax.numpy as jnp
from jax.experimental import pallas as pl
from jax.experimental.pallas import tpu as pltpu


def _round_up(x, m):
    return ((x + m - 1) // m) * m


def dnn_kernel(x_ref, w1_ref, b1_ref, w2_ref, b2_ref, wh_ref, bh_ref, o_ref):
    cdt = w1_ref.dtype                                        # compute dtype (bf16 or f32)
    x = x_ref[...].astype(cdt)                                # (TM, D_in)

    # fc1 + relu (K = D_in, MXU K-starved by construction; f32 accumulate)
    h1 = jnp.dot(x, w1_ref[...], preferred_element_type=jnp.float32) + b1_ref[...]
    h1 = jnp.maximum(h1, 0.0)                                 # (TM, 256), f32

    # fc2 + relu
    h2 = jnp.dot(h1.astype(cdt), w2_ref[...],
                 preferred_element_type=jnp.float32) + b2_ref[...]
    h2 = jnp.maximum(h2, 0.0)                                 # (TM, 64), f32

    # fused heads (6-class | 5-class | zero-pad to 128-lane multiple) + relu,
    # single lane-dense store; cast to the (possibly bf16) output dtype here.
    oh = jnp.dot(h2.astype(cdt), wh_ref[...],
                 preferred_element_type=jnp.float32) + bh_ref[...]
    o_ref[...] = jnp.maximum(oh, 0.0).astype(o_ref.dtype)     # (TM, N_pad)


def make_params(key, input_dim, out6=6, out5=5, dtype=jnp.float32):
    """Deterministic synthetic parameters matching the PyTorch module's shapes."""
    ks = jax.random.split(key, 8)

    def linear(kw, kb, fan_in, fan_out):
        bound = 1.0 / jnp.sqrt(fan_in)
        # stored as (in, out): already the transpose of PyTorch's (out, in)
        w = jax.random.uniform(kw, (fan_in, fan_out), dtype, -bound, bound)
        b = jax.random.uniform(kb, (1, fan_out), dtype, -bound, bound)
        return w, b

    w1, b1 = linear(ks[0], ks[1], input_dim, 256)
    w2, b2 = linear(ks[2], ks[3], 256, 64)
    w6, b6 = linear(ks[4], ks[5], 64, input_dim * out6)
    w5, b5 = linear(ks[6], ks[7], 64, input_dim * out5)
    return (w1, b1, w2, b2, w6, b6, w5, b5)


def prepare_params(raw_params, input_dim, out6=6, out5=5,
                   compute_dtype=jnp.bfloat16):
    """One-time prep: fuse/pad the heads and cast weights to the compute dtype.

    Hoisted out of dnn_forward so the concat / pad / casts do not rerun (as
    XLA ops re-reading the weights from HBM) on every forward call.
    """
    w1, b1, w2, b2, w6, b6, w5, b5 = raw_params
    n6 = input_dim * out6
    n5 = input_dim * out5
    n_heads = n6 + n5
    n_pad = _round_up(n_heads, 128)          # lane-dense head width

    wh = jnp.concatenate([w6, w5], axis=1)
    bh = jnp.concatenate([b6, b5], axis=1)
    if n_pad > n_heads:
        wh = jnp.pad(wh, ((0, 0), (0, n_pad - n_heads)))
        bh = jnp.pad(bh, ((0, 0), (0, n_pad - n_heads)))

    return {
        # weights in compute dtype (bf16-native MXU on all generations);
        # biases stay f32 so the f32 accumulate / relu path is untouched.
        "w1": w1.astype(compute_dtype),
        "b1": b1.astype(jnp.float32),
        "w2": w2.astype(compute_dtype),
        "b2": b2.astype(jnp.float32),
        "wh": wh.astype(compute_dtype),
        "bh": bh.astype(jnp.float32),
        "input_dim": input_dim,
        "out6": out6,
        "out5": out5,
        "n6": n6,
        "n5": n5,
        "n_pad": n_pad,
    }


def dnn_forward(x, prepped, *, tile_m=2048, out_dtype=jnp.bfloat16,
                split_outputs=True):
    w1, b1, w2, b2, wh, bh = (prepped[k] for k in ("w1", "b1", "w2", "b2", "wh", "bh"))
    input_dim = prepped["input_dim"]
    out6, out5 = prepped["out6"], prepped["out5"]
    n6, n5, n_pad = prepped["n6"], prepped["n5"], prepped["n_pad"]

    B, D_in = x.shape

    # --- batch tiling -------------------------------------------------------
    # Big tiles amortize the ~0.35us per-grid-step overhead; cap at ceil(B/2)
    # (rounded to the 8-row sublane) so the grid has >=2 steps whenever the
    # batch allows it and both v7x TensorCores get work ("parallel" axis).
    tm_cap = tile_m
    if B > 8:
        tm_cap = min(tm_cap, max(8, _round_up((B + 1) // 2, 8)))
    tm = min(tm_cap, max(8, _round_up(B, 8)))
    Bp = _round_up(B, tm)
    xp = x if Bp == B else jnp.pad(x, ((0, Bp - B), (0, 0)))
    grid = (Bp // tm,)

    const = lambda i: (0, 0)                  # weights stay VMEM-resident
    grid_spec = pltpu.PrefetchScalarGridSpec(
        num_scalar_prefetch=0,
        grid=grid,
        in_specs=[
            pl.BlockSpec((tm, D_in), lambda i: (i, 0)),   # x: per-step tile
            pl.BlockSpec(w1.shape, const),
            pl.BlockSpec(b1.shape, const),
            pl.BlockSpec(w2.shape, const),
            pl.BlockSpec(b2.shape, const),
            pl.BlockSpec(wh.shape, const),
            pl.BlockSpec(bh.shape, const),
        ],
        out_specs=pl.BlockSpec((tm, n_pad), lambda i: (i, 0)),
    )

    # Advisory cost estimate so XLA can overlap the kernel with neighbors.
    flops = 2 * Bp * (D_in * 256 + 256 * 64 + 64 * n_pad)
    param_bytes = sum(int(a.size) * a.dtype.itemsize for a in (w1, b1, w2, b2, wh, bh))
    bytes_accessed = (Bp * D_in * x.dtype.itemsize
                      + param_bytes
                      + Bp * n_pad * jnp.dtype(out_dtype).itemsize)

    o = pl.pallas_call(
        dnn_kernel,
        out_shape=jax.ShapeDtypeStruct((Bp, n_pad), out_dtype),
        grid_spec=grid_spec,
        compiler_params=pltpu.CompilerParams(
            dimension_semantics=("parallel",)),   # 2 TCs on v7x; harmless elsewhere
        cost_estimate=pl.CostEstimate(flops=flops, transcendentals=0,
                                      bytes_accessed=bytes_accessed),
    )(xp, w1, b1, w2, b2, wh, bh)

    o = o[:B]
    if not split_outputs:
        # Perf path: hand consumers the padded lane-dense slab directly
        # (cols [0, n6) = 6-class logits, [n6, n6+n5) = 5-class logits) and
        # let them fuse the slice/reshape, avoiding extra HBM copies.
        return o

    # Module-compatible path: matches torch's .view(-1, input_dim, 6/5).
    output_6_class = o[:, :n6].reshape(-1, input_dim, out6)
    output_5_class = o[:, n6:n6 + n5].reshape(-1, input_dim, out5)
    return output_6_class, output_5_class


def dnn_reference(x, raw_params, input_dim, out6=6, out5=5):
    """Pure-JAX f32 reference for correctness checking."""
    w1, b1, w2, b2, w6, b6, w5, b5 = raw_params
    h1 = jnp.maximum(x @ w1 + b1, 0.0)
    h2 = jnp.maximum(h1 @ w2 + b2, 0.0)
    o6 = jnp.maximum(h2 @ w6 + b6, 0.0).reshape(-1, input_dim, out6)
    o5 = jnp.maximum(h2 @ w5 + b5, 0.0).reshape(-1, input_dim, out5)
    return o6, o5


if __name__ == "__main__":
    input_dim = 8
    output_dim_SF_class = 6   # hard-wired by the .view(-1, input_dim, 6) in forward
    output_dim_Ptx_class = 5  # hard-wired by the .view(-1, input_dim, 5) in forward

    key = jax.random.PRNGKey(0)
    k_x, k_p, k_x2 = jax.random.split(key, 3)
    raw = make_params(k_p, input_dim, output_dim_SF_class, output_dim_Ptx_class)

    # one-time parameter preparation (hoisted out of the forward pass)
    prep_f32 = prepare_params(raw, input_dim, output_dim_SF_class,
                              output_dim_Ptx_class, compute_dtype=jnp.float32)
    prep_bf16 = prepare_params(raw, input_dim, output_dim_SF_class,
                               output_dim_Ptx_class, compute_dtype=jnp.bfloat16)

    # --- test 1: tiny batch (original module usage), strict f32/f32 path ---
    x_small = jax.random.normal(k_x, (2, input_dim), jnp.float32)
    out6, out5 = dnn_forward(x_small, prep_f32, out_dtype=jnp.float32)
    jax.block_until_ready((out6, out5))
    ref6, ref5 = dnn_reference(x_small, raw, input_dim,
                               output_dim_SF_class, output_dim_Ptx_class)
    assert out6.shape == (2, input_dim, output_dim_SF_class)
    assert out5.shape == (2, input_dim, output_dim_Ptx_class)
    assert jnp.allclose(out6, ref6, atol=1e-5, rtol=1e-5)
    assert jnp.allclose(out5, ref5, atol=1e-5, rtol=1e-5)

    # --- test 2: batched grid path (>=2 tiles + batch padding), default
    #     bf16-compute / bf16-output fast path, loose tolerance ---
    x_big = jax.random.normal(k_x2, (300, input_dim), jnp.float32)
    bref6, bref5 = dnn_reference(x_big, raw, input_dim,
                                 output_dim_SF_class, output_dim_Ptx_class)
    bout6, bout5 = dnn_forward(x_big, prep_bf16)
    jax.block_until_ready((bout6, bout5))
    assert bout6.shape == (300, input_dim, output_dim_SF_class)
    assert bout5.shape == (300, input_dim, output_dim_Ptx_class)
    assert bout6.dtype == jnp.bfloat16 and bout5.dtype == jnp.bfloat16
    assert jnp.allclose(bout6.astype(jnp.float32), bref6, atol=6e-2, rtol=6e-2)
    assert jnp.allclose(bout5.astype(jnp.float32), bref5, atol=6e-2, rtol=6e-2)

    # --- test 3: padded-slab output (no post-kernel split copies), f32 ---
    slab = dnn_forward(x_big, prep_f32, out_dtype=jnp.float32,
                       split_outputs=False)
    jax.block_until_ready(slab)
    n6 = input_dim * output_dim_SF_class
    n5 = input_dim * output_dim_Ptx_class
    s6 = slab[:, :n6].reshape(-1, input_dim, output_dim_SF_class)
    s5 = slab[:, n6:n6 + n5].reshape(-1, input_dim, output_dim_Ptx_class)
    assert jnp.allclose(s6, bref6, atol=1e-5, rtol=1e-5)
    assert jnp.allclose(s5, bref5, atol=1e-5, rtol=1e-5)

    print("KERNEL_OK")
</pallas_src>

<mosaic_0001>
module attributes {stable_mosaic.version = 11 : i64} {
  func.func @dnn_kernel(%arg0: i32, %arg1: memref<8x8xf32, #tpu.memory_space<vmem>>, %arg2: memref<8x256xf32, #tpu.memory_space<vmem>>, %arg3: memref<1x256xf32, #tpu.memory_space<vmem>>, %arg4: memref<256x64xf32, #tpu.memory_space<vmem>>, %arg5: memref<1x64xf32, #tpu.memory_space<vmem>>, %arg6: memref<64x128xf32, #tpu.memory_space<vmem>>, %arg7: memref<1x128xf32, #tpu.memory_space<vmem>>, %arg8: memref<8x128xf32, #tpu.memory_space<vmem>>) attributes {dimension_semantics = [#tpu.dimension_semantics<parallel>], iteration_bounds = array<i64: 1>, scalar_prefetch = 0 : i64, scratch_operands = 0 : i64, tpu.core_type = #tpu.core_type<tc>, window_params = [{transform_indices = @transform_0, window_bounds = array<i64: 8, 8>}, {pipeline_mode = #tpu.pipeline_mode<synchronous>, transform_indices = @transform_1, window_bounds = array<i64: 8, 256>}, {pipeline_mode = #tpu.pipeline_mode<synchronous>, transform_indices = @transform_2, window_bounds = array<i64: 1, 256>}, {pipeline_mode = #tpu.pipeline_mode<synchronous>, transform_indices = @transform_3, window_bounds = array<i64: 256, 64>}, {pipeline_mode = #tpu.pipeline_mode<synchronous>, transform_indices = @transform_4, window_bounds = array<i64: 1, 64>}, {pipeline_mode = #tpu.pipeline_mode<synchronous>, transform_indices = @transform_5, window_bounds = array<i64: 64, 128>}, {pipeline_mode = #tpu.pipeline_mode<synchronous>, transform_indices = @transform_6, window_bounds = array<i64: 1, 128>}, {transform_indices = @transform_7, window_bounds = array<i64: 8, 128>}]} {
    %c0 = arith.constant 0 : index
    %c0_0 = arith.constant 0 : index
    %0 = vector.load %arg1[%c0, %c0_0] : memref<8x8xf32, #tpu.memory_space<vmem>>, vector<8x8xf32>
    %c0_1 = arith.constant 0 : index
    %c0_2 = arith.constant 0 : index
    %1 = vector.load %arg2[%c0_1, %c0_2] : memref<8x256xf32, #tpu.memory_space<vmem>>, vector<8x256xf32>
    %cst = arith.constant dense<0.000000e+00> : vector<8x256xf32>
    %2 = tpu.matmul %0, %1, %cst {dimension_numbers = #tpu.dot_dimension_numbers<[1], [0], [0], [1], [0, 0, 1, 1], [], []>} : vector<8x8xf32>, vector<8x256xf32>, vector<8x256xf32> -> vector<8x256xf32>
    %c0_3 = arith.constant 0 : index
    %c0_4 = arith.constant 0 : index
    %3 = vector.load %arg3[%c0_3, %c0_4] : memref<1x256xf32, #tpu.memory_space<vmem>>, vector<1x256xf32>
    %4 = vector.broadcast %3 : vector<1x256xf32> to vector<8x256xf32>
    %5 = arith.addf %2, %4 : vector<8x256xf32>
    %cst_5 = arith.constant 0.000000e+00 : f32
    %6 = vector.broadcast %cst_5 : f32 to vector<8x256xf32>
    %7 = arith.maximumf %5, %6 : vector<8x256xf32>
    %c0_6 = arith.constant 0 : index
    %c0_7 = arith.constant 0 : index
    %8 = vector.load %arg4[%c0_6, %c0_7] : memref<256x64xf32, #tpu.memory_space<vmem>>, vector<256x64xf32>
    %cst_8 = arith.constant dense<0.000000e+00> : vector<8x64xf32>
    %9 = tpu.matmul %7, %8, %cst_8 {dimension_numbers = #tpu.dot_dimension_numbers<[1], [0], [0], [1], [0, 0, 1, 1], [], []>} : vector<8x256xf32>, vector<256x64xf32>, vector<8x64xf32> -> vector<8x64xf32>
    %c0_9 = arith.constant 0 : index
    %c0_10 = arith.constant 0 : index
    %10 = vector.load %arg5[%c0_9, %c0_10] : memref<1x64xf32, #tpu.memory_space<vmem>>, vector<1x64xf32>
    %11 = vector.broadcast %10 : vector<1x64xf32> to vector<8x64xf32>
    %12 = arith.addf %9, %11 : vector<8x64xf32>
    %cst_11 = arith.constant 0.000000e+00 : f32
    %13 = vector.broadcast %cst_11 : f32 to vector<8x64xf32>
    %14 = arith.maximumf %12, %13 : vector<8x64xf32>
    %c0_12 = arith.constant 0 : index
    %c0_13 = arith.constant 0 : index
    %15 = vector.load %arg6[%c0_12, %c0_13] : memref<64x128xf32, #tpu.memory_space<vmem>>, vector<64x128xf32>
    %cst_14 = arith.constant dense<0.000000e+00> : vector<8x128xf32>
    %16 = tpu.matmul %14, %15, %cst_14 {dimension_numbers = #tpu.dot_dimension_numbers<[1], [0], [0], [1], [0, 0, 1, 1], [], []>} : vector<8x64xf32>, vector<64x128xf32>, vector<8x128xf32> -> vector<8x128xf32>
    %c0_15 = arith.constant 0 : index
    %c0_16 = arith.constant 0 : index
    %17 = vector.load %arg7[%c0_15, %c0_16] : memref<1x128xf32, #tpu.memory_space<vmem>>, vector<1x128xf32>
    %18 = vector.broadcast %17 : vector<1x128xf32> to vector<8x128xf32>
    %19 = arith.addf %16, %18 : vector<8x128xf32>
    %cst_17 = arith.constant 0.000000e+00 : f32
    %20 = vector.broadcast %cst_17 : f32 to vector<8x128xf32>
    %21 = arith.maximumf %19, %20 : vector<8x128xf32>
    %c0_18 = arith.constant 0 : index
    %c0_19 = arith.constant 0 : index
    %22 = vector.load %arg8[%c0_18, %c0_19] : memref<8x128xf32, #tpu.memory_space<vmem>>, vector<8x128xf32>
    tpu.vector_store %arg8[%c0_18, %c0_19], %21 {strides = array<i32>} : memref<8x128xf32, #tpu.memory_space<vmem>>, vector<8x128xf32>,
    return
  }
  func.func @transform_0(%arg0: i32) -> (i32, i32) {
    %c0_i32 = arith.constant 0 : i32
    %c0_i32_0 = arith.constant 0 : i32
    return %arg0, %c0_i32 : i32, i32
  }
  func.func @transform_1(%arg0: i32) -> (i32, i32) {
    %c0_i32 = arith.constant 0 : i32
    %c0_i32_0 = arith.constant 0 : i32
    %c0_i32_1 = arith.constant 0 : i32
    return %c0_i32, %c0_i32_0 : i32, i32
  }
  func.func @transform_2(%arg0: i32) -> (i32, i32) {
    %c0_i32 = arith.constant 0 : i32
    %c0_i32_0 = arith.constant 0 : i32
    %c0_i32_1 = arith.constant 0 : i32
    return %c0_i32, %c0_i32_0 : i32, i32
  }
  func.func @transform_3(%arg0: i32) -> (i32, i32) {
    %c0_i32 = arith.constant 0 : i32
    %c0_i32_0 = arith.constant 0 : i32
    %c0_i32_1 = arith.constant 0 : i32
    return %c0_i32, %c0_i32_0 : i32, i32
  }
  func.func @transform_4(%arg0: i32) -> (i32, i32) {
    %c0_i32 = arith.constant 0 : i32
    %c0_i32_0 = arith.constant 0 : i32
    %c0_i32_1 = arith.constant 0 : i32
    return %c0_i32, %c0_i32_0 : i32, i32
  }
  func.func @transform_5(%arg0: i32) -> (i32, i32) {
    %c0_i32 = arith.constant 0 : i32
    %c0_i32_0 = arith.constant 0 : i32
    %c0_i32_1 = arith.constant 0 : i32
    return %c0_i32, %c0_i32_0 : i32, i32
  }
  func.func @transform_6(%arg0: i32) -> (i32, i32) {
    %c0_i32 = arith.constant 0 : i32
    %c0_i32_0 = arith.constant 0 : i32
    %c0_i32_1 = arith.constant 0 : i32
    return %c0_i32, %c0_i32_0 : i32, i32
  }
  func.func @transform_7(%arg0: i32) -> (i32, i32) {
    %c0_i32 = arith.constant 0 : i32
    %c0_i32_0 = arith.constant 0 : i32
    return %arg0, %c0_i32 : i32, i32
  }
}

</mosaic_0001>

<bundles_post_ra>
// kernel: tpu_custom_call.1
= control target key start
LH: loop header
LB: loop body
LE: loop exit
PB: predicated region body
PF: predicated region fallthrough
CT: control target
= control target key end

     0   :  { %vm42_vm0 = vcmask 64512   ;;  %v473_v3 = vmov 0.0   ;;  %s669_s0 = inlined_call_operand.vmem [shape: f32[8,8], index: 0, kind: input, shape index: {}]   ;;  %s670_s1 = inlined_call_operand.vmem [shape: f32[8,256], index: 1, kind: input, shape index: {}]   ;;  %s671_s2 = inlined_call_operand.vmem [shape: f32[1,256], index: 2, kind: input, shape index: {}]   ;;  %s672_s3 = inlined_call_operand.vmem [shape: f32[256,64], index: 3, kind: input, shape index: {}]   ;;  %s673_s4 = inlined_call_operand.vmem [shape: f32[1,64], index: 4, kind: input, shape index: {}]   ;;  %s674_s5 = inlined_call_operand.vmem [shape: f32[64,128], index: 5, kind: input, shape index: {}]   ;;  %s675_s6 = inlined_call_operand.vmem [shape: f32[1,128], index: 6, kind: input, shape index: {}]   ;;  %s676_s7 = inlined_call_operand.hbm [shape: f32[8,128], index: 7, kind: output, shape index: {}]  }
   0x1   :  { %v29_v0 = vld [vmem:[%s670_s1 + $0x8] sm:$0xff]  ;;  %v28_v1 = vld [vmem:[%s670_s1] sm:$0xff]  ;;  %110 = vmatprep.mubr.f32.mxu0 %v473_v3  ;;  %v137_v9 = vld [vmem:[%s672_s3 + $0x90] sm:$0xff] }
   0x2   :  { %v27_v2 = vld [vmem:[%s669_s0] sm:$0xff]  ;;  %46 = vmatprep.subr.mxu0 %v29_v0  ;;  %v136_v5 = vld [vmem:[%s672_s3 + $0x88] sm:$0xff]  ;;  %v138_v10 = vld [vmem:[%s672_s3 + $0x98] sm:$0xff] }
   0x3   :  { %v135_v4 = vld [vmem:[%s672_s3 + $0x80] sm:$0xff]  ;;  %47 = vmatpush1.msra.mxu0 %v28_v1  ;;  %v120_v8 = vld [vmem:[%s672_s3 + $0x8] sm:$0xff]  ;;  %v405_v12 = vpack.c.bf16 %v138_v10, %v137_v9  ;;  %v121_v13 = vld [vmem:[%s672_s3 + $0x10] sm:$0xff] }
   0x4   :  { %v119_v6 = vld [vmem:[%s672_s3] sm:$0xff]  ;;  %v401_v7 = vpack.c.bf16 %v136_v5, %v135_v4  ;;  %334 = vmatmul.mubr.msk.f32.vlgmr.msra.gmra.mrb[0].mxu0 %vm42_vm0, %v27_v2  ;;  %v122_v14 = vld [vmem:[%s672_s3 + $0x18] sm:$0xff]  ;;  %v140_v16 = vld [vmem:[%s672_s3 + $0xa8] sm:$0xff] }
   0x5   :  { %v403_v11 = vpack.c.bf16 %v120_v8, %v119_v6  ;;  %v139_v15 = vld [vmem:[%s672_s3 + $0xa0] sm:$0xff]  ;;  %v407_v17 = vpack.c.bf16 %v122_v14, %v121_v13  ;;  %v124_v20 = vld [vmem:[%s672_s3 + $0x28] sm:$0xff]  ;;  %v141_v21 = vld [vmem:[%s672_s3 + $0xb0] sm:$0xff] }
   0x6   :  { %402 = vmatprep.subr.bf16.mxu1 %v401_v7  ;;  %v409_v18 = vpack.c.bf16 %v140_v16, %v139_v15  ;;  %v123_v19 = vld [vmem:[%s672_s3 + $0x20] sm:$0xff]  ;;  %v142_v22 = vld [vmem:[%s672_s3 + $0xb8] sm:$0xff]  ;;  %v125_v25 = vld [vmem:[%s672_s3 + $0x30] sm:$0xff] }
   0x7   :  { %404 = vmatpush3.bf16.msra.mxu1 %v403_v11  ;;  %v411_v23 = vpack.c.bf16 %v124_v20, %v123_v19  ;;  %v413_v24 = vpack.c.bf16 %v142_v22, %v141_v21  ;;  %v126_v26 = vld [vmem:[%s672_s3 + $0x38] sm:$0xff] }
   0x8   :  { %406 = vmatprep.subr.bf16.mxu1 %v405_v12 }
   0xb   :  { %408 = vmatpush3.bf16.msra.mxu1 %v407_v17 }
   0xc   :  { %410 = vmatprep.subr.bf16.mxu1 %v409_v18 }
   0xd   :  { %12 = vsyncpa [#allocation3], 0  ;;  %v143_v27 = vld [vmem:[%s672_s3 + $0xc0] sm:$0xff]  ;;  %v144_v28 = vld [vmem:[%s672_s3 + $0xc8] sm:$0xff]  ;;  %v415_v29 = vpack.c.bf16 %v126_v26, %v125_v25  ;;  %v474_v55 = vmov 0.0|0.0   ;;  %v32_v59 = vlaneseq  ;;  %vm475_vm1 = vmmov 0  }
   0xe   :  { %v417_v30 = vpack.c.bf16 %v144_v28, %v143_v27  ;;  %v127_v31 = vld [vmem:[%s672_s3 + $0x40] sm:$0xff]  ;;  %v128_v32 = vld [vmem:[%s672_s3 + $0x48] sm:$0xff]  ;;  %v145_v33 = vld [vmem:[%s672_s3 + $0xd0] sm:$0xff]  ;;  %433 = vmatprep.subr.bf16.mxu0 %v474_v55  ;;  %398 = vmatprep.mubr.msk.f32.mxu0 %vm475_vm1, %v473_v3  ;;  %vm244_vm2 = vcmask 523264  }
   0xf   :  { %412 = vmatpush3.bf16.msra.mxu1 %v411_v23  ;;  %v146_v34 = vld [vmem:[%s672_s3 + $0xd8] sm:$0xff]  ;;  %v419_v35 = vpack.c.bf16 %v128_v32, %v127_v31  ;;  %v129_v37 = vld [vmem:[%s672_s3 + $0x50] sm:$0xff]  ;;  %v147_v39 = vld [vmem:[%s672_s3 + $0xe0] sm:$0xff]  ;;  %v33_v60 = vshrl.u32 %v32_v59, 7 }
  0x10   :  { %414 = vmatprep.subr.bf16.mxu1 %v413_v24  ;;  %v421_v36 = vpack.c.bf16 %v146_v34, %v145_v33  ;;  %v130_v38 = vld [vmem:[%s672_s3 + $0x58] sm:$0xff]  ;;  %v148_v40 = vld [vmem:[%s672_s3 + $0xe8] sm:$0xff]  ;;  %v131_v43 = vld [vmem:[%s672_s3 + $0x60] sm:$0xff] }
  0x11   :  { %v423_v41 = vpack.c.bf16 %v130_v38, %v129_v37  ;;  %v425_v42 = vpack.c.bf16 %v148_v40, %v147_v39  ;;  %v132_v44 = vld [vmem:[%s672_s3 + $0x68] sm:$0xff]  ;;  %v149_v46 = vld [vmem:[%s672_s3 + $0xf0] sm:$0xff]  ;;  %v150_v47 = vld [vmem:[%s672_s3 + $0xf8] sm:$0xff]  ;;  %v34_v61 = vsub.s32 0, %v33_v60  ;;  %v38_v63 = vsub.s32 1, %v33_v60 }
  0x12   :  { %v427_v45 = vpack.c.bf16 %v132_v44, %v131_v43  ;;  %v429_v48 = vpack.c.bf16 %v150_v47, %v149_v46  ;;  %v133_v49 = vld [vmem:[%s672_s3 + $0x70] sm:$0xff]  ;;  %v134_v50 = vld [vmem:[%s672_s3 + $0x78] sm:$0xff]  ;;  %v229_v52 = vld [vmem:[%s674_s5] sm:$0xff] }
  0x13   :  { %416 = vmatpush3.bf16.msra.mxu1 %v415_v29  ;;  %v431_v51 = vpack.c.bf16 %v134_v50, %v133_v49  ;;  %v230_v53 = vld [vmem:[%s674_s5 + $0x8] sm:$0xff]  ;;  %v231_v54 = vld [vmem:[%s674_s5 + $0x10] sm:$0xff]  ;;  %v232_v57 = vld [vmem:[%s674_s5 + $0x18] sm:$0xff] }
  0x14   :  { %418 = vmatprep.subr.bf16.mxu1 %v417_v30  ;;  %v434_v56 = vpack.c.bf16 %v230_v53, %v229_v52  ;;  %v437_v58 = vpack.c.bf16 %v232_v57, %v231_v54  ;;  %v30_v62 = vld [vmem:[%s671_s2] sm:$0x3]  ;;  %v234_v10 = vld [vmem:[%s674_s5 + $0x28] sm:$0xff]  ;;  %v235_v12 = vld [vmem:[%s674_s5 + $0x30] sm:$0xff] }
  0x15   :  { %v35_v0 = vrot.slane %v30_v62, %v34_v61  ;;  %v39_v1 = vrot.slane %v30_v62, %v38_v63  ;;  %v233_v9 = vld [vmem:[%s674_s5 + $0x20] sm:$0xff]  ;;  %v236_v13 = vld [vmem:[%s674_s5 + $0x38] sm:$0xff]  ;;  %s476_s5 = smov [#allocation2]  }
  0x16   :  { %435 = vmatpush3.bf16.msra.mxu0 %v434_v56  ;;  %v440_v11 = vpack.c.bf16 %v234_v10, %v233_v9  ;;  %v443_v14 = vpack.c.bf16 %v236_v13, %v235_v12  ;;  %v335_v16 = vld [vmem:[%s673_s4] ss:$0 sm:$0xff]  ;;  %s326_s14 = sshll.u32 %s476_s5, 4  ;;  %s327_s14 = int_to_ptr.vmem [resolvable:$true] %s326_s14 }
  0x17   :  { %420 = vmatpush3.bf16.msra.mxu1 %v419_v35  ;;  %436 = vmatprep.subr.bf16.mxu0 %v474_v55  ;;  %v336_v21 = vld [vmem:[%s675_s6] ss:$0 sm:$0xff]  ;;  %s449_s15 = scalar_lea.vmem %s327_s14, 128  ;;  %p454_p1 = scmp.lt.s32.totalorder %s327_s14, %s327_s14 }
  0x18   :  { %422 = vmatprep.subr.bf16.mxu1 %v421_v36  ;;  %p450_p0 = scmp.ne.s32.totalorder %s327_s14, %s449_s15  ;;  %p455_p2 = scmp.lt.s32.totalorder %s449_s15, %s449_s15 }
  0x1a   :  { %438 = vmatpush3.bf16.msra.mxu0 %v437_v58  ;;  %p456_p3 = por %p455_p2, %p454_p1 }
  0x1b   :  { %424 = vmatpush3.bf16.msra.mxu1 %v423_v41  ;;  %439 = vmatprep.subr.bf16.mxu0 %v474_v55 }
  0x1c   :  { %426 = vmatprep.subr.bf16.mxu1 %v425_v42  ;;  %p457_p4 = pnand %p456_p3, %p450_p0 }
  0x1e   :  { %441 = vmatpush3.bf16.msra.mxu0 %v440_v11 }
  0x1f   :  { %428 = vmatpush3.bf16.msra.mxu1 %v427_v45  ;;  %442 = vmatprep.subr.bf16.mxu0 %v474_v55 }
  0x20   :  { %430 = vmatprep.subr.bf16.mxu1 %v429_v48 }
  0x22   :  { %444 = vmatpush3.bf16.msra.mxu0 %v443_v14 }
  0x23   :  { %432 = vmatpush3.bf16.msra.mxu1 %v431_v51 }
  0xd7   :  { %v112_v2 = vpop.f32.mrb[0].mxu0 }
  0xd8   :  { %v113_v4 = vadd.f32 %v112_v2, %v35_v0  ;;  %v114_v5 = vpop.f32.mrb[1].mxu0 }
  0xd9   :  { %v115_v6 = vadd.f32 %v114_v5, %v39_v1 }
  0xda   :  { %v117_v8 = vmax.f32 %v113_v4, 0.0 }
  0xdb   :  { %v118_v7 = vmax.f32 %v115_v6, 0.0 }
  0xdd   :  { %222 = vmatprep.mubr.f32.mxu1 %v118_v7 }
  0xde   :  { %223 = vmatmul.mubr.f32.vlgmr.msra.gmra.mrb[0].mxu1 %v117_v8 }
 0x1b1   :  { %v370_v15 = vpop.f32.mrb[0].mxu1 }
 0x1b2   :  { %v371_v17 = vpop.f32.mrb[1].mxu1 }
 0x1b3   :  { %v372_v18 = vadd.f32 %v371_v17, %v370_v15 }
 0x1b5   :  { %v225_v19 = vadd.f32 %v372_v18, %v335_v16 }
 0x1b7   :  { %v228_v20 = vmax.f32 %v225_v19, 0.0 }
 0x1b9   :  { %399 = vmatmul.mubr.msk.f32.vlgmr.msra.gmra.mrb[2].mxu0 %vm244_vm2, %v228_v20 }
 0x28c   :  { %v314_v22 = vpop.f32.mrb[2].mxu0 }
 0x28d   :  { %v315_v23 = vadd.f32 %v336_v21, %v314_v22  ;;  %v400_v3 = vpop.f32.mrb[3].mxu0 }
 0x28f   :  { %v318_v24 = vmax.f32 %v315_v23, 0.0 }
 0x291   :  { %319 = vst [vmem:[#allocation2] sm:$0xff] %v318_v24 }
 0x292   :  { %460 = shalt.err (!%p457_p4)
}
 0x293   :  { %s461_s17 = scalar_lea.hbm %s676_s7, 128 }
 0x294   :  { %p462_p5 = scmp.ne.s32.totalorder %s676_s7, %s461_s17  ;;  %p465_p6 = scmp.lt.u32.totalorder %s461_s17, %s676_s7 }
 0x296   :  { %p467_p7 = pnand %p465_p6, %p462_p5 }
 0x298   :  { %470 = shalt.err (!%p467_p7)
}
 0x299   :  { %329 = dma.vmem_to_hbm [thread:$0]  %s327_s14, 128, %s676_s7, [#allocation3]  }
 0x29a   :  { %471 = dma.done.wait [#allocation3], 128  }
 0x29b   :  { %472 = vsyncadd [#allocation3], 4294967168 }
 0x29c   :  { %333 = vsyncpa [#allocation3], 1 }

</bundles_post_ra>
